<compile_context>
chip_gen: v6e
topology: v6e:2x2x1
jax: 0.10.0
libtpu: 0.0.40
codegen_flags: <defaults>
</compile_context>

<pallas_src>
import math

import jax
import jax.numpy as jnp
from jax.experimental import pallas as pl
from jax.experimental.pallas import tpu as pltpu


# ----------------------------------------------------------------------------
# Synthetic target registry (the reference module reads a global `target`
# object; deterministic stand-in here).
# ----------------------------------------------------------------------------
CATEGORICAL_TARGETS = ["cat_a", "cat_b"]             # each -> nn.Linear(embed, 2)
CONTINUOUS_TARGETS = ["cont_a", "cont_b", "cont_c"]  # each -> nn.Linear(embed, 1)

_LANES = 128
_SUBLANES = 8


def _round_up(v, m):
    return ((v + m - 1) // m) * m


def _round_down(v, m):
    return (v // m) * m


# ----------------------------------------------------------------------------
# Pallas kernel: fused y_tile = x_tile @ W + b   (one batch tile per grid step)
# ----------------------------------------------------------------------------
def _decoder_kernel(x_ref, w_ref, b_ref, o_ref):
    acc = jnp.dot(x_ref[...], w_ref[...], preferred_element_type=jnp.float32)
    o_ref[...] = (acc + b_ref[...]).astype(o_ref.dtype)


def _vmem_limit_bytes():
    """Per-generation scoped-VMEM limit: 64 MiB on v5e/v6e, 32 MiB on v7x."""
    try:
        phys = pltpu.get_tpu_info().vmem_capacity_bytes
    except Exception:
        phys = 64 * 1024 * 1024  # conservative fallback (v7x-sized)
    return min(phys // 2, 64 * 1024 * 1024)


def individual_decoder_forward(x, w_pad, b_pad, n_out, *,
                               out_dtype=jnp.float32,
                               block_rows=None,
                               trim=True):
    """x: (batch, embed); w_pad: (embed, n_out_pad); b_pad: (1, n_out_pad) f32.

    Returns (batch, n_out) if trim else the lane-padded (batch, n_out_pad).
    out_dtype=jnp.bfloat16 halves output write traffic (f32 accumulation kept).
    """
    batch, embed = x.shape
    n_out_pad = w_pad.shape[1]
    out_itemsize = jnp.dtype(out_dtype).itemsize
    vmem_limit = _vmem_limit_bytes()

    # --- batch tile size --------------------------------------------------
    if block_rows is None:
        # Resident (conservatively double-buffered) W + b footprint.
        fixed_bytes = (2 * embed * n_out_pad * w_pad.dtype.itemsize
                       + 2 * n_out_pad * b_pad.dtype.itemsize)
        # Streaming footprint per row: double-buffered x tile + output tile.
        row_bytes = 2 * (embed * x.dtype.itemsize + n_out_pad * out_itemsize)
        budget = int(0.75 * vmem_limit) - fixed_bytes
        if budget > 0:
            tm = max(_SUBLANES, _round_down(budget // row_bytes, _SUBLANES))
        else:
            tm = _SUBLANES  # TODO(synk): huge embed -> K-axis tiling instead
        tm = min(tm, 4096)
    else:
        tm = max(_SUBLANES, _round_up(block_rows, _SUBLANES))
    tm = min(tm, _round_up(batch, _SUBLANES))

    # Megacore (v7x): keep >=2 (prefer >=4) grid steps so both TensorCores get
    # work; measured-neutral on single-TC v5e/v6e.
    if batch >= 4 * _SUBLANES:
        min_steps = 4
    elif batch >= 2 * _SUBLANES:
        min_steps = 2
    else:
        min_steps = 1
    if min_steps > 1:
        tm = min(tm, max(_SUBLANES, _round_down(batch // min_steps, _SUBLANES)))

    grid = (pl.cdiv(batch, tm),)

    cost = pl.CostEstimate(
        flops=2 * batch * embed * n_out_pad,
        transcendentals=0,
        bytes_accessed=(batch * embed * x.dtype.itemsize
                        + embed * n_out_pad * w_pad.dtype.itemsize
                        + n_out_pad * b_pad.dtype.itemsize
                        + batch * n_out_pad * out_itemsize),
    )

    y_pad = pl.pallas_call(
        _decoder_kernel,
        out_shape=jax.ShapeDtypeStruct((batch, n_out_pad), out_dtype),
        grid_spec=pl.GridSpec(
            grid=grid,
            in_specs=[
                # x streams block-by-block over the batch axis (ragged last
                # tile handled by Pallas; rows are independent so garbage in
                # the padded rows never reaches a valid output row).
                pl.BlockSpec((tm, embed), lambda i: (i, 0)),
                # W / b: constant index_map -> VMEM-resident across steps.
                pl.BlockSpec((embed, n_out_pad), lambda i: (0, 0)),
                pl.BlockSpec((1, n_out_pad), lambda i: (0, 0)),
            ],
            out_specs=pl.BlockSpec((tm, n_out_pad), lambda i: (i, 0)),
        ),
        compiler_params=pltpu.CompilerParams(
            dimension_semantics=("parallel",),
            vmem_limit_bytes=vmem_limit,
        ),
        cost_estimate=cost,
    )(x, w_pad, b_pad)

    if trim:
        # Column-only slice; under jit this fuses into the consumer.
        return y_pad[:, :n_out]
    return y_pad


# ----------------------------------------------------------------------------
# Deterministic parameter construction (mirrors nn.Linear's default init:
# U(-1/sqrt(fan_in), 1/sqrt(fan_in)) for weight and bias), concatenated in the
# same order as the torch.cat in the reference forward.  The 128-lane padding
# of W / b is done HERE (once), not per forward call.
# ----------------------------------------------------------------------------
def build_params(key, embed_size, *, param_dtype=jnp.float32):
    bound = 1.0 / math.sqrt(embed_size)
    w_cols, b_parts = [], []
    for _ in CATEGORICAL_TARGETS:        # categorical first (matches torch.cat)
        key, kw, kb = jax.random.split(key, 3)
        w_cols.append(jax.random.uniform(kw, (embed_size, 2), jnp.float32, -bound, bound))
        b_parts.append(jax.random.uniform(kb, (2,), jnp.float32, -bound, bound))
    for _ in CONTINUOUS_TARGETS:
        key, kw, kb = jax.random.split(key, 3)
        w_cols.append(jax.random.uniform(kw, (embed_size, 1), jnp.float32, -bound, bound))
        b_parts.append(jax.random.uniform(kb, (1,), jnp.float32, -bound, bound))
    w = jnp.concatenate(w_cols, axis=1)   # (embed, 2*n_cat + n_cont)
    b = jnp.concatenate(b_parts, axis=0)  # (2*n_cat + n_cont,)
    n_out = w.shape[1]

    n_out_pad = max(_LANES, _round_up(n_out, _LANES))
    w_pad = (jnp.zeros((embed_size, n_out_pad), param_dtype)
             .at[:, :n_out].set(w.astype(param_dtype)))
    b_pad = (jnp.zeros((1, n_out_pad), jnp.float32)
             .at[0, :n_out].set(b))
    return w, b, w_pad, b_pad, n_out


if __name__ == "__main__":
    batch = 20          # deliberately NOT a multiple of 8: exercises the ragged last tile
    embed_size = 32

    key = jax.random.PRNGKey(0)
    key, kx = jax.random.split(key)
    x = jax.random.normal(kx, (batch, embed_size), jnp.float32)

    w, b, w_pad, b_pad, n_out = build_params(key, embed_size)

    # --- f32 path: exact semantics of the PyTorch module ---------------------
    y = jax.block_until_ready(individual_decoder_forward(x, w_pad, b_pad, n_out))
    y_ref = x @ w + b[None, :]
    assert y.shape == (batch, n_out)
    assert jnp.allclose(y, y_ref, atol=1e-5, rtol=1e-5)

    # --- bf16-output path: halves padded output write traffic ----------------
    y_bf16 = jax.block_until_ready(
        individual_decoder_forward(x, w_pad, b_pad, n_out, out_dtype=jnp.bfloat16))
    assert y_bf16.shape == (batch, n_out)
    assert jnp.allclose(y_bf16.astype(jnp.float32), y_ref, atol=5e-2, rtol=5e-2)

    # --- untrimmed (lane-padded) output for fusion-friendly consumers --------
    y_slab = jax.block_until_ready(
        individual_decoder_forward(x, w_pad, b_pad, n_out, trim=False))
    assert y_slab.shape == (batch, w_pad.shape[1])
    assert jnp.allclose(y_slab[:, :n_out], y_ref, atol=1e-5, rtol=1e-5)

    print("KERNEL_OK")
</pallas_src>

<mosaic_0001>
module attributes {stable_mosaic.version = 11 : i64} {
  func.func @_decoder_kernel(%arg0: i32, %arg1: memref<8x32xf32, #tpu.memory_space<vmem>>, %arg2: memref<32x128xf32, #tpu.memory_space<vmem>>, %arg3: memref<1x128xf32, #tpu.memory_space<vmem>>, %arg4: memref<8x128xf32, #tpu.memory_space<vmem>>) attributes {dimension_semantics = [#tpu.dimension_semantics<parallel>], iteration_bounds = array<i64: 3>, scalar_prefetch = 0 : i64, scratch_operands = 0 : i64, tpu.core_type = #tpu.core_type<tc>, window_params = [{transform_indices = @transform_0, window_bounds = array<i64: 8, 32>}, {pipeline_mode = #tpu.pipeline_mode<synchronous>, transform_indices = @transform_1, window_bounds = array<i64: 32, 128>}, {pipeline_mode = #tpu.pipeline_mode<synchronous>, transform_indices = @transform_2, window_bounds = array<i64: 1, 128>}, {transform_indices = @transform_3, window_bounds = array<i64: 8, 128>}]} {
    %c0 = arith.constant 0 : index
    %c0_0 = arith.constant 0 : index
    %0 = vector.load %arg1[%c0, %c0_0] : memref<8x32xf32, #tpu.memory_space<vmem>>, vector<8x32xf32>
    %c0_1 = arith.constant 0 : index
    %c0_2 = arith.constant 0 : index
    %1 = vector.load %arg2[%c0_1, %c0_2] : memref<32x128xf32, #tpu.memory_space<vmem>>, vector<32x128xf32>
    %cst = arith.constant dense<0.000000e+00> : vector<8x128xf32>
    %2 = tpu.matmul %0, %1, %cst {dimension_numbers = #tpu.dot_dimension_numbers<[1], [0], [0], [1], [0, 0, 1, 1], [], []>} : vector<8x32xf32>, vector<32x128xf32>, vector<8x128xf32> -> vector<8x128xf32>
    %c0_3 = arith.constant 0 : index
    %c0_4 = arith.constant 0 : index
    %3 = vector.load %arg3[%c0_3, %c0_4] : memref<1x128xf32, #tpu.memory_space<vmem>>, vector<1x128xf32>
    %4 = vector.broadcast %3 : vector<1x128xf32> to vector<8x128xf32>
    %5 = arith.addf %2, %4 : vector<8x128xf32>
    %c0_5 = arith.constant 0 : index
    %c0_6 = arith.constant 0 : index
    %6 = vector.load %arg4[%c0_5, %c0_6] : memref<8x128xf32, #tpu.memory_space<vmem>>, vector<8x128xf32>
    tpu.vector_store %arg4[%c0_5, %c0_6], %5 {strides = array<i32>} : memref<8x128xf32, #tpu.memory_space<vmem>>, vector<8x128xf32>,
    return
  }
  func.func @transform_0(%arg0: i32) -> (i32, i32) {
    %c0_i32 = arith.constant 0 : i32
    %c0_i32_0 = arith.constant 0 : i32
    return %arg0, %c0_i32 : i32, i32
  }
  func.func @transform_1(%arg0: i32) -> (i32, i32) {
    %c0_i32 = arith.constant 0 : i32
    %c0_i32_0 = arith.constant 0 : i32
    %c0_i32_1 = arith.constant 0 : i32
    return %c0_i32, %c0_i32_0 : i32, i32
  }
  func.func @transform_2(%arg0: i32) -> (i32, i32) {
    %c0_i32 = arith.constant 0 : i32
    %c0_i32_0 = arith.constant 0 : i32
    %c0_i32_1 = arith.constant 0 : i32
    return %c0_i32, %c0_i32_0 : i32, i32
  }
  func.func @transform_3(%arg0: i32) -> (i32, i32) {
    %c0_i32 = arith.constant 0 : i32
    %c0_i32_0 = arith.constant 0 : i32
    return %arg0, %c0_i32 : i32, i32
  }
}

</mosaic_0001>

<bundles_post_ra>
// kernel: tpu_custom_call.1
= control target key start
LH: loop header
LB: loop body
LE: loop exit
PB: predicated region body
PF: predicated region fallthrough
CT: control target
= control target key end

     0   :  { %8 = vsyncpa [#allocation3], 0  ;;  %s787_s0 = inlined_call_operand.hbm [shape: f32[20,32], index: 0, kind: input, shape index: {}]   ;;  %s788_s1 = inlined_call_operand.hbm [shape: f32[32,128], index: 1, kind: input, shape index: {}]   ;;  %s789_s2 = inlined_call_operand.vmem [shape: f32[1,128], index: 2, kind: input, shape index: {}]   ;;  %s790_s3 = inlined_call_operand.hbm [shape: f32[20,128], index: 3, kind: output, shape index: {}]  }
   0x1   :  { %10 = vsyncpa [#allocation3 + $0x1], 0 }
   0x2   :  { %11 = vsyncpa [#allocation6], 0 }
   0x3   :  { %12 = vsyncpa [#allocation4], 0 }
   0x4   :  { %14 = vsyncpa [#allocation4 + $0x1], 0  ;;  %s626_s12 = smov 0   ;;  %s628_s13 = smov 0  }
   0x5   :  { %s630_s14 = smov 0   ;;  %s632_s15 = smov 0  }
   0x6 LB: > { %s647_s16 = sadd.s32 4294967295, %s597_s15   ;;  %s382_s17 = sadd.s32 4294967294, %s597_s15   ;;  %s597_s15 = sphi %s632_s15, %s811_s15   ;;  %s593_s14 = sphi %s630_s14, %s810_s14   ;;  %s589_s13 = sphi %s628_s13, %s809_s13   ;;  %s585_s12 = sphi %s626_s12, %s808_s12  }
   0x7   : > { %p40_p0 = scmp.ne.s32.totalorder %s589_s13, %s585_s12  ;;  %p791_p1 = scmp.eq.s32.totalorder %s647_s16, 0 }
   0x8   : > { %p112_p3 = scmp.eq.s32.totalorder %s382_s17, 2  ;;  %p383_p5 = scmp.ge.s32.totalorder %s597_s15, 1 }
   0x9   : > { %p656_p4 = por %p791_p1, %p40_p0  ;;  %p119_p7 = scmp.lt.s32.totalorder %s597_s15, 4 }
   0xa   : > { %p661_p6 = por %p112_p3, %p40_p0  ;;  %s599_s21 = smov [#allocation5]  }
   0xb   : > { %s795_s18 = scalar_select %p656_p4, 1, 0 }
   0xc   : > { %s796_s19 = scalar_select %p661_p6, 1, 0 }
   0xd   : > { %p666_p8 = pnand %p383_p5, %p119_p7  ;;  %s131_s22 = sshll.u32 %s599_s21, 4  ;;  %s132_s22 = int_to_ptr.vmem [resolvable:$true] %s131_s22 }
   0xe   : > { %s679_s24 = sadd.s32 1, %s597_s15   ;;  %s27_s25 = sadd.s32 1, %s593_s14 }
   0xf   : > { %s797_s20 = scalar_select %p666_p8, 1, 0 }
  0x10   : > { %p422_p9 = pneg %p666_p8  ;;  %s24_s26 = ssub.s32 %s597_s15, %s679_s24 }
  0x11   : > { %s486_s27 = scalar_lea.vmem %s132_s22, 512  ;;  %p494_p3 = scmp.lt.s32.totalorder %s132_s22, %s132_s22 }
  0x12   : > { %p674_p10 = pnand %p422_p9, %p791_p1  ;;  %p487_p12 = scmp.ne.s32.totalorder %s132_s22, %s486_s27 }
  0x13   : > { %p495_p5 = scmp.lt.s32.totalorder %s486_s27, %s486_s27 }
  0x14   : > { %p477_p11 = pneg %p674_p10 }
  0x15   : > { %p496_p7 = por %p495_p5, %p494_p3 }
  0x16   : > { %p489_p13 = pnand %p487_p12, %p477_p11 }
  0x18   : > { %p490_p0 = pneg %p489_p13 }
  0x1a   : > { %p497_p2 = pnand %p496_p7, %p490_p0 }
  0x1c   : > { %500 = shalt.err (!%p497_p2)
}
  0x1d   : > { %s600_s28 = smov 128   ;;  %s601_s29 = smov 8  }
  0x1e   : > { %425 = dma.hbm_to_vmem [thread:$0]  (!%p674_p10), %s788_s1, 512, %s132_s22, [#allocation6], %s600_s28, %s600_s28, %s601_s29  }
  0x1f   : > { %p25_p9 = scmp.eq.s32.totalorder %s24_s26, 0  ;;  %p34_p11 = scmp.ne.s32.totalorder %s593_s14, %s589_s13 }
  0x20   : > { %p35_p12 = scmp.eq.s32.totalorder %s597_s15, 0  ;;  %p435_p2 = scmp.lt.s32.totalorder %s597_s15, 3 }
  0x21   : > { %s696_s5 = scalar_select %p25_p9, %s593_s14, %s27_s25  }
  0x22   : > { %p36_p13 = por %p35_p12, %p34_p11  ;;  %p799_p0 = scmp.eq.s32.totalorder %s647_s16, 2 }
  0x23   : > { %s148_s7 = sand.u32 1, %s593_s14   ;;  %s387_s8 = sshll.u32 %s597_s15, 7 }
  0x24   : > { %p700_p3 = por %p799_p0, %p34_p11  ;;  %s386_s9 = sshll.u32 %s148_s7, 3 }
  0x25   : > { %s709_s17 = scalar_lea.hbm %s787_s0, %s387_s8  ;;  %s152_s21 = scalar_lea.vmem [#allocation2], %s386_s9 }
  0x26   : > { %s800_s6 = scalar_select %p700_p3, 1, 0 }
  0x27   : > { %s159_s22 = sshll.u32 %s152_s21, 4  ;;  %p711_p10 = pnand %p435_p2, %p36_p13  ;;  %s160_s22 = int_to_ptr.vmem [resolvable:$true] %s159_s22 }
  0x28   : > { %s149_s25 = scalar_lea.sflag [#allocation3], %s148_s7  ;;  %s501_s26 = scalar_lea.hbm %s709_s17, 128 }
  0x29   : > { %p502_p5 = scmp.ne.s32.totalorder %s709_s17, %s501_s26  ;;  %p503_p7 = pneg %p711_p10 }
  0x2a   : > { %s506_s29 = scalar_lea.hbm %s787_s0, 384  ;;  %p507_p12 = scmp.lt.s32.totalorder %s709_s17, %s787_s0 }
  0x2b   : > { %p504_p9 = pnand %p503_p7, %p502_p5  ;;  %p508_p2 = scmp.lt.s32.totalorder %s506_s29, %s501_s26 }
  0x2d   : > { %p505_p11 = pneg %p504_p9  ;;  %p509_p13 = por %p508_p2, %p507_p12 }
  0x2f   : > { %p510_p0 = pnand %p509_p13, %p505_p11 }
  0x31   : > { %513 = shalt.err (!%p510_p0)
}
  0x32   : > { %s514_s8 = scalar_lea.vmem %s160_s22, 128  ;;  %s602_s7 = smov [#allocation2]  }
  0x33   : > { %p515_p1 = scmp.ne.s32.totalorder %s160_s22, %s514_s8  ;;  %s519_s9 = sshll.u32 %s602_s7, 4  ;;  %s520_s9 = int_to_ptr.vmem [resolvable:$false] %s519_s9 }
  0x34   : > { %s521_s10 = scalar_lea.vmem %s520_s9, 256  ;;  %p522_p5 = scmp.lt.s32.totalorder %s160_s22, %s520_s9 }
  0x35   : > { %p517_p6 = pnand %p515_p1, %p503_p7  ;;  %p523_p9 = scmp.lt.s32.totalorder %s521_s10, %s514_s8 }
  0x37   : > { %p518_p3 = pneg %p517_p6  ;;  %p524_p4 = por %p523_p9, %p522_p5 }
  0x39   : > { %p525_p8 = pnand %p524_p4, %p518_p3 }
  0x3b   : > { %528 = shalt.err (!%p525_p8)
}
  0x3c   : > { %429 = dma.hbm_to_vmem [thread:$0]  (!%p711_p10), %s709_s17, 128, %s160_s22, %s149_s25  }
  0x3d   : > { %p802_p11 = scmp.ne.s32.totalorder %s797_s20, 0 }
  0x3e   : > { %s732_s11 = sand.u32 (!%p802_p11), 1, %s589_s13   ;;  %p803_p1 = scmp.ne.s32.totalorder (!%p802_p11), %s795_s18, 0 }
  0x3f   : > { %168 = sbr.rel (%p802_p11) target bundleno = 289 (0x121), region = 32  ;;  %s389_s21 = sshll.u32 (!%p802_p11), %s732_s11, 3 }
  0x40   : > { %s171_s26 = scalar_lea.sflag (!%p802_p11), [#allocation3], %s732_s11  ;;  %s174_s27 = scalar_lea.vmem (!%p802_p11), [#allocation2], %s389_s21 }
  0x44   : > { %572 = dma.done.wait (%p803_p1), %s171_s26, 128  }
  0x45   : > { %574 = vsyncadd (%p803_p1), %s171_s26, 4294967168  ;;  %p804_p4 = scmp.eq.s32.totalorder %s647_s16, 0 }
  0x47   : > { %576 = dma.done.wait (%p804_p4), [#allocation6], 512   ;;  %p805_p6 = pmov %p804_p4 }
  0x48   : > { %v603_v0 = vmov 0.0   ;;  %vm604_vm0 = vmmov 0   ;;  %v205_v1 = vld [vmem:[#allocation5 + $0x18] sm:$0xff]  ;;  %v204_v2 = vld [vmem:[#allocation5 + $0x10] sm:$0xff]  ;;  %v203_v3 = vld [vmem:[#allocation5 + $0x8] sm:$0xff]  ;;  %vm213_vm1 = vcmask 261120  }
  0x49   : > { %578 = vsyncadd (%p805_p6), [#allocation6], 4294966784  ;;  %403 = vmatprep.subr.mxu0 %v603_v0  ;;  %411 = vmatprep.mubr.msk.f32.mxu0 %vm604_vm0, %v603_v0  ;;  %v202_v4 = vld [vmem:[#allocation5] sm:$0xff]  ;;  %v201_v5 = vld [vmem:[%s174_s27] sm:$0xff]  ;;  %s395_s17 = sshll.u32 %s647_s16, 7  ;;  %s200_s22 = scalar_lea.vmem [#allocation7], %s389_s21 }
  0x4a   : > { %404 = vmatpush3.msra.mxu0 %v205_v1  ;;  %v392_v6 = vld [vmem:[%s789_s2] ss:$0 sm:$0xff]  ;;  %s302_s23 = sshll.u32 %s200_s22, 4  ;;  %s751_s29 = scalar_lea.hbm %s790_s3, %s395_s17  ;;  %s303_s23 = int_to_ptr.vmem [resolvable:$true] %s302_s23 }
  0x4b   : > { %405 = vmatprep.subr.mxu0 %v603_v0  ;;  %s289_s30 = scalar_lea.sflag [#allocation4], %s732_s11  ;;  %s529_s4 = scalar_lea.vmem %s303_s23, 128 }
  0x4c   : > { %406 = vmatpush3.msra.mxu0 %v204_v2  ;;  %p530_p8 = scmp.ne.s32.totalorder %s303_s23, %s529_s4  ;;  %p806_p3 = scmp.ne.s32.totalorder %s800_s6, 0 }
  0x4d   : > { %407 = vmatprep.subr.mxu0 %v603_v0  ;;  %s605_s8 = smov [#allocation7]  }
  0x4e   : > { %408 = vmatpush3.msra.mxu0 %v203_v3  ;;  %p531_p10 = pnand %p530_p8, %p806_p3  ;;  %s533_s16 = sshll.u32 %s605_s8, 4  ;;  %s534_s16 = int_to_ptr.vmem [resolvable:$false] %s533_s16 }
  0x4f   : > { %409 = vmatprep.subr.mxu0 %v603_v0  ;;  %s535_s7 = scalar_lea.vmem %s534_s16, 256  ;;  %p536_p12 = scmp.lt.s32.totalorder %s303_s23, %s534_s16 }
  0x50   : > { %410 = vmatpush3.msra.mxu0 %v202_v4  ;;  %p532_p7 = pneg %p531_p10  ;;  %p537_p2 = scmp.lt.s32.totalorder %s535_s7, %s529_s4 }
  0x51   : > { %412 = vmatmul.mubr.msk.f32.vlgmr.msra.gmra.mxu0 %vm213_vm1, %v201_v5 }
  0x52   : > { %p538_p13 = por %p537_p2, %p536_p12 }
  0x54   : > { %p539_p0 = pnand %p538_p13, %p532_p7 }
 0x111   : > { %v283_v7 = vpop.f32.mrf.mxu0 }
 0x112   : > { %v284_v8 = vadd.f32 %v392_v6, %v283_v7 }
 0x113   : > { %v413_v9 = vpop.f32.mrf.mxu0 }
 0x114   : > { %287 = vst [vmem:[%s200_s22] sm:$0xff] %v284_v8 }
 0x115   : > { %542 = shalt.err (!%p539_p0)
}
 0x116   : > { %s543_s9 = scalar_lea.hbm %s751_s29, 128  ;;  %s547_s21 = scalar_lea.hbm %s790_s3, 384 }
 0x117   : > { %p544_p5 = scmp.ne.s32.totalorder %s751_s29, %s543_s9  ;;  %p548_p1 = scmp.lt.s32.totalorder %s751_s29, %s790_s3 }
 0x118   : > { %p549_p4 = scmp.lt.s32.totalorder %s547_s21, %s543_s9 }
 0x119   : > { %p545_p9 = pnand %p544_p5, %p806_p3 }
 0x11a   : > { %p550_p6 = por %p549_p4, %p548_p1 }
 0x11b   : > { %p546_p11 = pneg %p545_p9 }
 0x11d   : > { %p551_p8 = pnand %p550_p6, %p546_p11 }
 0x11f   : > { %554 = shalt.err (!%p551_p8)
}
 0x120   : > { %420 = dma.vmem_to_hbm [thread:$0]  (%p806_p3), %s303_s23, 128, %s751_s29, %s289_s30  }
 0x121 PF: > { %p437_p10 = scmp.ge.s32.totalorder %s597_s15, 2  ;;  %s314_s18 = sand.u32 1, %s585_s12  }
 0x122   : > { %p807_p7 = scmp.ne.s32.totalorder %s796_s19, 0  ;;  %s315_s20 = scalar_lea.sflag [#allocation4], %s314_s18 }
 0x124   : > { %p431_p12 = pnand %p437_p10, %p807_p7 }
 0x126   : > { %p432_p2 = pneg %p431_p12 }
 0x128   : > { %580 = dma.done.wait (%p432_p2), %s315_s20, 128  }
 0x129   : > { %582 = vsyncadd (%p432_p2), %s315_s20, 4294967168  ;;  %p17_p13 = scmp.ge.s32.totalorder %s679_s24, 5   ;;  %s808_s12 = smov %s589_s13 }
 0x12a   : > { %s809_s13 = smov %s593_s14  ;;  %s810_s14 = smov %s696_s5 }
 0x12b   : > { %s811_s15 = smov %s679_s24  ;;  %19 = sbr.rel (!%p17_p13) target bundleno = 6 (0x6), region = 81 }
 0x130   :  { %320 = vsyncpa [#allocation3], 1 }
 0x131   :  { %322 = vsyncpa [#allocation3 + $0x1], 1 }
 0x132   :  { %323 = vsyncpa [#allocation6], 1 }
 0x133   :  { %324 = vsyncpa [#allocation4], 1 }
 0x134   :  { %326 = vsyncpa [#allocation4 + $0x1], 1 }

</bundles_post_ra>
